<compile_context>
chip_gen: v7x
topology: tpu7x:2x2x1
jax: 0.10.0
libtpu: 0.0.40
codegen_flags: <defaults>
</compile_context>

<pallas_src>
import jax
import jax.numpy as jnp
from jax import lax
from jax.experimental import pallas as pl
from jax.experimental.pallas import tpu as pltpu


def _make_kernel(wp, mtile):
    """4-tap (2x2) conv-as-matmul + folded-BN bias + ReLU on one row band."""
    offs = (0, 1, wp, wp + 1)          # tap (dr, dc) -> flat offset dr*wp + dc

    def kernel(band_ref, w_ref, b_ref, o_ref):
        coutp = o_ref.shape[2]
        acc = jnp.zeros((mtile, coutp), jnp.float32)
        for t in range(4):                                    # unrolled taps
            lhs = band_ref[0, pl.ds(offs[t], mtile), :]       # (mtile, 4*Cin) bf16
            acc = acc + jnp.dot(lhs, w_ref[t],
                                preferred_element_type=jnp.float32)
        y = jnp.maximum(acc + b_ref[...], 0.0)                # bias + ReLU
        o_ref[0] = y.astype(o_ref.dtype)

    return kernel


def stream_generate_block(x_nchw, w_oihw, gamma, beta, run_mean, run_var,
                          eps=1e-5, target_tile_m=512,
                          compute_dtype=jnp.bfloat16):
    N, Cin, H, W = x_nchw.shape
    Cout = w_oihw.shape[0]
    Ho, Wo = (H + 1) // 2, (W + 1) // 2          # conv k3 s2 p1 output size
    He, We = 2 * Ho, 2 * Wo                      # input padded up to even H/W
    C4 = 4 * Cin                                 # space-to-depth channels
    Wp = Wo + 1                                  # +1 left halo column
    Coutp = ((Cout + 127) // 128) * 128          # lane-dense output channels

    # ---- row-tile selection: ~target_tile_m output rows / grid step, capped
    #      by a conservative VMEM budget (v7x only has 64 MiB total). ---------
    def _vmem_bytes(t):
        band = ((((t + 1) * Wp + 1) + 7) // 8 * 8) * C4 * 2
        outb = t * Wp * Coutp * 4
        wgt = 4 * C4 * Coutp * 2 + Coutp * 4
        return 2 * (band + outb) + wgt            # double-buffered streams

    T = max(1, min(Ho, max(1, target_tile_m // Wp)))
    while T > 1 and _vmem_bytes(T) > 12 * 1024 * 1024:
        T = max(1, T // 2)
    n_t = int(pl.cdiv(Ho, T))
    Mtile = T * Wp                                # output rows per grid step
    Bflat = (T + 1) * Wp + 1                      # band rows (+1-row halo, +1 pad)
    Bflat = ((Bflat + 7) // 8) * 8

    # ---- glue (fused by XLA under jit): NCHW -> NHWC -> 2x2 space-to-depth --
    x = jnp.transpose(x_nchw, (0, 2, 3, 1))                       # (N,H,W,Cin)
    x = jnp.pad(x, ((0, 0), (0, He - H), (0, We - W), (0, 0)))    # to even H/W
    xs = x.reshape(N, Ho, 2, Wo, 2, Cin)
    xs = xs.transpose(0, 1, 3, 2, 4, 5).reshape(N, Ho, Wo, C4)    # (pr,pc,ci)
    # front halo (conv padding) + tail rows so Ho splits into n_t tiles
    xsp = jnp.pad(xs, ((0, 0), (1, n_t * T - Ho), (1, 0), (0, 0)))
    # overlapping row bands (1-row halo per tile), flattened to (rows*Wp, C4)
    row_idx = (jnp.arange(n_t) * T)[:, None] + jnp.arange(T + 1)[None, :]
    bands = jnp.take(xsp, row_idx, axis=1)                        # (N,n_t,T+1,Wp,C4)
    bands = bands.reshape(N * n_t, (T + 1) * Wp, C4)
    bands = jnp.pad(bands, ((0, 0), (0, Bflat - (T + 1) * Wp), (0, 0)))
    bands = bands.astype(compute_dtype)

    # ---- weights: 3x3 conv -> 4 taps of a 2x2 conv on the s2d grid ----------
    # pad the 3x3 kernel to 4x4 at the front, split each spatial dim into
    # (tap, phase); tap = 2*dr + dc, K-row = (pr*2 + pc)*Cin + ci
    scale = gamma / jnp.sqrt(run_var + eps)                       # (Cout,)
    bias = beta - run_mean * scale                                # (Cout,)
    wf = w_oihw * scale[:, None, None, None]                      # fold BN scale
    wf = jnp.pad(wf, ((0, 0), (0, 0), (1, 0), (1, 0)))            # (Cout,Cin,4,4)
    wf = wf.reshape(Cout, Cin, 2, 2, 2, 2)                        # (co,ci,dr,pr,dc,pc)
    w2 = jnp.transpose(wf, (2, 4, 3, 5, 1, 0)).reshape(4, C4, Cout)
    w2 = jnp.pad(w2, ((0, 0), (0, 0), (0, Coutp - Cout))).astype(compute_dtype)
    b2 = jnp.pad(bias, (0, Coutp - Cout)).reshape(1, Coutp).astype(jnp.float32)

    grid = (N * n_t,)
    out_p = pl.pallas_call(
        _make_kernel(Wp, Mtile),
        out_shape=jax.ShapeDtypeStruct((N * n_t, Mtile, Coutp), x_nchw.dtype),
        grid_spec=pltpu.PrefetchScalarGridSpec(
            num_scalar_prefetch=0,
            grid=grid,
            in_specs=[
                pl.BlockSpec((1, Bflat, C4), lambda i: (i, 0, 0)),   # row band
                # constant operands (weights / bias); could be single-buffered
                # via pipeline_mode=pl.Buffered(1) where supported
                pl.BlockSpec((4, C4, Coutp), lambda i: (0, 0, 0)),
                pl.BlockSpec((1, Coutp), lambda i: (0, 0)),
            ],
            out_specs=pl.BlockSpec((1, Mtile, Coutp), lambda i: (i, 0, 0)),
        ),
        compiler_params=pltpu.CompilerParams(
            dimension_semantics=("parallel",),
            vmem_limit_bytes=int(min(max(4 * _vmem_bytes(T), 16 * 2**20),
                                     48 * 2**20)),
        ),
        cost_estimate=pl.CostEstimate(
            flops=2 * N * Ho * Wo * 9 * Cin * Cout,
            transcendentals=0,
            bytes_accessed=int(bands.size * bands.dtype.itemsize
                               + w2.size * w2.dtype.itemsize
                               + b2.size * 4
                               + N * n_t * Mtile * Coutp
                               * x_nchw.dtype.itemsize),
        ),
    )(bands, w2, b2)

    # strip halo column / padded rows / padded channels, back to NCHW
    out = out_p.reshape(N, n_t * T, Wp, Coutp)[:, :Ho, :Wo, :Cout]
    return jnp.transpose(out, (0, 3, 1, 2))


def reference(x_nchw, w_oihw, gamma, beta, run_mean, run_var, eps=1e-5):
    y = lax.conv_general_dilated(
        x_nchw, w_oihw, window_strides=(2, 2), padding=((1, 1), (1, 1)),
        dimension_numbers=("NCHW", "OIHW", "NCHW"))
    inv = 1.0 / jnp.sqrt(run_var + eps)
    y = (y - run_mean[None, :, None, None]) * inv[None, :, None, None]
    y = y * gamma[None, :, None, None] + beta[None, :, None, None]
    return jnp.maximum(y, 0.0)


def reference_bf16(x_nchw, w_oihw, gamma, beta, run_mean, run_var, eps=1e-5):
    # same math as the kernel: BN folded, bf16-quantized operands, f32 accum
    s = gamma / jnp.sqrt(run_var + eps)
    b = beta - run_mean * s
    wq = (w_oihw * s[:, None, None, None]).astype(jnp.bfloat16).astype(jnp.float32)
    xq = x_nchw.astype(jnp.bfloat16).astype(jnp.float32)
    y = lax.conv_general_dilated(
        xq, wq, window_strides=(2, 2), padding=((1, 1), (1, 1)),
        dimension_numbers=("NCHW", "OIHW", "NCHW"))
    return jnp.maximum(y + b[None, :, None, None], 0.0)


if __name__ == "__main__":
    key = jax.random.PRNGKey(0)
    k_x, k_w = jax.random.split(key)

    N, Cin, H, W = 2, 4, 16, 16
    Cout = Cin * 2

    x = jax.random.normal(k_x, (N, Cin, H, W), dtype=jnp.float32)
    w = jax.random.normal(k_w, (Cout, Cin, 3, 3), dtype=jnp.float32) * 0.1

    # deterministic, non-trivial BatchNorm parameters / running stats
    gamma = 0.5 + 0.1 * jnp.arange(Cout, dtype=jnp.float32)
    beta = 0.05 * jnp.arange(Cout, dtype=jnp.float32) - 0.1
    run_mean = 0.02 * jnp.arange(Cout, dtype=jnp.float32)
    run_var = 0.5 + 0.05 * jnp.arange(Cout, dtype=jnp.float32)

    fwd = jax.jit(stream_generate_block)
    out = jax.block_until_ready(fwd(x, w, gamma, beta, run_mean, run_var))

    assert out.shape == (N, Cout, H // 2, W // 2), out.shape

    # exact-math check vs. a reference using the same bf16-quantized operands
    ref_q = reference_bf16(x, w, gamma, beta, run_mean, run_var)
    assert jnp.allclose(out, ref_q, atol=1e-3, rtol=1e-3), \
        float(jnp.max(jnp.abs(out - ref_q)))

    # semantic check vs. the full-f32 PyTorch-equivalent reference
    # (tolerance reflects bf16 operand quantization on the MXU)
    ref = reference(x, w, gamma, beta, run_mean, run_var)
    assert jnp.allclose(out, ref, atol=5e-2, rtol=5e-2), \
        float(jnp.max(jnp.abs(out - ref)))

    print("KERNEL_OK")
</pallas_src>

<mosaic_0001>
module attributes {stable_mosaic.version = 11 : i64} {
  func.func @kernel(%arg0: i32, %arg1: memref<1x88x16xbf16, #tpu.memory_space<vmem>>, %arg2: memref<4x16x128xbf16, #tpu.memory_space<vmem>>, %arg3: memref<1x128xf32, #tpu.memory_space<vmem>>, %arg4: memref<1x72x128xf32, #tpu.memory_space<vmem>>) attributes {dimension_semantics = [#tpu.dimension_semantics<parallel>], iteration_bounds = array<i64: 2>, scalar_prefetch = 0 : i64, scratch_operands = 0 : i64, tpu.core_type = #tpu.core_type<tc>, window_params = [{transform_indices = @transform_0, window_bounds = array<i64: 1, 88, 16>}, {pipeline_mode = #tpu.pipeline_mode<synchronous>, transform_indices = @transform_1, window_bounds = array<i64: 4, 16, 128>}, {pipeline_mode = #tpu.pipeline_mode<synchronous>, transform_indices = @transform_2, window_bounds = array<i64: 1, 128>}, {transform_indices = @transform_3, window_bounds = array<i64: 1, 72, 128>}]} {
    %cst = arith.constant 0.000000e+00 : f32
    %0 = vector.broadcast %cst : f32 to vector<72x128xf32>
    %c0 = arith.constant 0 : index
    %c0_0 = arith.constant 0 : index
    %c0_1 = arith.constant 0 : index
    %1 = vector.load %arg1[%c0, %c0_0, %c0_1] : memref<1x88x16xbf16, #tpu.memory_space<vmem>>, vector<1x72x16xbf16>
    %2 = vector.shape_cast %1 : vector<1x72x16xbf16> to vector<72x16xbf16>
    %c0_2 = arith.constant 0 : index
    %c0_3 = arith.constant 0 : index
    %c0_4 = arith.constant 0 : index
    %3 = vector.load %arg2[%c0_2, %c0_3, %c0_4] : memref<4x16x128xbf16, #tpu.memory_space<vmem>>, vector<1x16x128xbf16>
    %4 = vector.shape_cast %3 : vector<1x16x128xbf16> to vector<16x128xbf16>
    %cst_5 = arith.constant dense<0.000000e+00> : vector<72x128xf32>
    %5 = tpu.matmul %2, %4, %cst_5 {dimension_numbers = #tpu.dot_dimension_numbers<[1], [0], [0], [1], [0, 0, 1, 1], [], []>} : vector<72x16xbf16>, vector<16x128xbf16>, vector<72x128xf32> -> vector<72x128xf32>
    %6 = arith.addf %0, %5 : vector<72x128xf32>
    %c0_6 = arith.constant 0 : index
    %c1 = arith.constant 1 : index
    %c0_7 = arith.constant 0 : index
    %7 = vector.load %arg1[%c0_6, %c1, %c0_7] : memref<1x88x16xbf16, #tpu.memory_space<vmem>>, vector<1x72x16xbf16>
    %8 = vector.shape_cast %7 : vector<1x72x16xbf16> to vector<72x16xbf16>
    %c1_8 = arith.constant 1 : index
    %c0_9 = arith.constant 0 : index
    %c0_10 = arith.constant 0 : index
    %9 = vector.load %arg2[%c1_8, %c0_9, %c0_10] : memref<4x16x128xbf16, #tpu.memory_space<vmem>>, vector<1x16x128xbf16>
    %10 = vector.shape_cast %9 : vector<1x16x128xbf16> to vector<16x128xbf16>
    %cst_11 = arith.constant dense<0.000000e+00> : vector<72x128xf32>
    %11 = tpu.matmul %8, %10, %cst_11 {dimension_numbers = #tpu.dot_dimension_numbers<[1], [0], [0], [1], [0, 0, 1, 1], [], []>} : vector<72x16xbf16>, vector<16x128xbf16>, vector<72x128xf32> -> vector<72x128xf32>
    %12 = arith.addf %6, %11 : vector<72x128xf32>
    %c0_12 = arith.constant 0 : index
    %c9 = arith.constant 9 : index
    %c0_13 = arith.constant 0 : index
    %13 = vector.load %arg1[%c0_12, %c9, %c0_13] : memref<1x88x16xbf16, #tpu.memory_space<vmem>>, vector<1x72x16xbf16>
    %14 = vector.shape_cast %13 : vector<1x72x16xbf16> to vector<72x16xbf16>
    %c2 = arith.constant 2 : index
    %c0_14 = arith.constant 0 : index
    %c0_15 = arith.constant 0 : index
    %15 = vector.load %arg2[%c2, %c0_14, %c0_15] : memref<4x16x128xbf16, #tpu.memory_space<vmem>>, vector<1x16x128xbf16>
    %16 = vector.shape_cast %15 : vector<1x16x128xbf16> to vector<16x128xbf16>
    %cst_16 = arith.constant dense<0.000000e+00> : vector<72x128xf32>
    %17 = tpu.matmul %14, %16, %cst_16 {dimension_numbers = #tpu.dot_dimension_numbers<[1], [0], [0], [1], [0, 0, 1, 1], [], []>} : vector<72x16xbf16>, vector<16x128xbf16>, vector<72x128xf32> -> vector<72x128xf32>
    %18 = arith.addf %12, %17 : vector<72x128xf32>
    %c0_17 = arith.constant 0 : index
    %c10 = arith.constant 10 : index
    %c0_18 = arith.constant 0 : index
    %19 = vector.load %arg1[%c0_17, %c10, %c0_18] : memref<1x88x16xbf16, #tpu.memory_space<vmem>>, vector<1x72x16xbf16>
    %20 = vector.shape_cast %19 : vector<1x72x16xbf16> to vector<72x16xbf16>
    %c3 = arith.constant 3 : index
    %c0_19 = arith.constant 0 : index
    %c0_20 = arith.constant 0 : index
    %21 = vector.load %arg2[%c3, %c0_19, %c0_20] : memref<4x16x128xbf16, #tpu.memory_space<vmem>>, vector<1x16x128xbf16>
    %22 = vector.shape_cast %21 : vector<1x16x128xbf16> to vector<16x128xbf16>
    %cst_21 = arith.constant dense<0.000000e+00> : vector<72x128xf32>
    %23 = tpu.matmul %20, %22, %cst_21 {dimension_numbers = #tpu.dot_dimension_numbers<[1], [0], [0], [1], [0, 0, 1, 1], [], []>} : vector<72x16xbf16>, vector<16x128xbf16>, vector<72x128xf32> -> vector<72x128xf32>
    %24 = arith.addf %18, %23 : vector<72x128xf32>
    %c0_22 = arith.constant 0 : index
    %c0_23 = arith.constant 0 : index
    %25 = vector.load %arg3[%c0_22, %c0_23] : memref<1x128xf32, #tpu.memory_space<vmem>>, vector<1x128xf32>
    %26 = vector.broadcast %25 : vector<1x128xf32> to vector<72x128xf32>
    %27 = arith.addf %24, %26 : vector<72x128xf32>
    %cst_24 = arith.constant 0.000000e+00 : f32
    %28 = vector.broadcast %cst_24 : f32 to vector<72x128xf32>
    %29 = arith.maximumf %27, %28 : vector<72x128xf32>
    %c0_25 = arith.constant 0 : index
    %c0_26 = arith.constant 0 : index
    %c0_27 = arith.constant 0 : index
    %30 = vector.load %arg4[%c0_25, %c0_26, %c0_27] : memref<1x72x128xf32, #tpu.memory_space<vmem>>, vector<1x72x128xf32>
    %31 = vector.shape_cast %30 : vector<1x72x128xf32> to vector<72x128xf32>
    %32 = vector.shape_cast %29 : vector<72x128xf32> to vector<1x72x128xf32>
    tpu.vector_store %arg4[%c0_25, %c0_26, %c0_27], %32 {strides = array<i32>} : memref<1x72x128xf32, #tpu.memory_space<vmem>>, vector<1x72x128xf32>,
    return
  }
  func.func @transform_0(%arg0: i32) -> (i32, i32, i32) {
    %c0_i32 = arith.constant 0 : i32
    %c0_i32_0 = arith.constant 0 : i32
    %c0_i32_1 = arith.constant 0 : i32
    return %arg0, %c0_i32, %c0_i32_0 : i32, i32, i32
  }
  func.func @transform_1(%arg0: i32) -> (i32, i32, i32) {
    %c0_i32 = arith.constant 0 : i32
    %c0_i32_0 = arith.constant 0 : i32
    %c0_i32_1 = arith.constant 0 : i32
    %c0_i32_2 = arith.constant 0 : i32
    return %c0_i32, %c0_i32_0, %c0_i32_1 : i32, i32, i32
  }
  func.func @transform_2(%arg0: i32) -> (i32, i32) {
    %c0_i32 = arith.constant 0 : i32
    %c0_i32_0 = arith.constant 0 : i32
    %c0_i32_1 = arith.constant 0 : i32
    return %c0_i32, %c0_i32_0 : i32, i32
  }
  func.func @transform_3(%arg0: i32) -> (i32, i32, i32) {
    %c0_i32 = arith.constant 0 : i32
    %c0_i32_0 = arith.constant 0 : i32
    %c0_i32_1 = arith.constant 0 : i32
    return %arg0, %c0_i32, %c0_i32_0 : i32, i32, i32
  }
}

</mosaic_0001>

<bundles_post_ra>
// kernel: stream_generate_block.1
= control target key start
LH: loop header
LB: loop body
LE: loop exit
PB: predicated region body
PF: predicated region fallthrough
CT: control target
= control target key end

     0   :  { %s1045_s12 = smov 0   ;;  %s1209_s0 = inlined_call_operand.vmem [shape: bf16[2,88,16], index: 0, kind: input, shape index: {}]   ;;  %s1210_s1 = inlined_call_operand.vmem [shape: bf16[4,16,128], index: 1, kind: input, shape index: {}]   ;;  %s1211_s2 = inlined_call_operand.vmem [shape: f32[1,128], index: 2, kind: input, shape index: {}]   ;;  %s1212_s3 = inlined_call_operand.vmem [shape: f32[2,72,128], index: 3, kind: output, shape index: {}]  }
   0x1 LB: > { %s823_s13 = sadd.s32 4294967295, %s1021_s12   ;;  %p827_p0 = scmp.ge.s32.totalorder %s1021_s12, 1  ;;  %s1021_s12 = sphi %s1045_s12, %s13_s12  }
   0x2   : > { %p137_p1 = scmp.lt.s32.totalorder %s1021_s12, 3 }
   0x4   : > { %p138_p2 = pnand %p827_p0, %p137_p1 }
   0x5   : > { %v999_v0 = vld [vmem:[%s1210_s1 + $0x8] sm:$0xff] (!%p138_p2)   ;;  %v1023_v1 = vmov (!%p138_p2), 0.0   ;;  %v1000_v2 = vld [vmem:[%s1210_s1] sm:$0xff] (!%p138_p2)   ;;  %vm1024_vm0 = vmmov (!%p138_p2), 0   ;;  %p161_p3 = scmp.lt.s32.totalorder (!%p138_p2), %s823_s13, 1  ;;  %vm258_vm1 = vcmask (!%p138_p2), 130048  }
   0x6   : > { %141 = sbr.rel (%p138_p2) target bundleno = 318 (0x13e), region = 32  ;;  %899 = vmatprep.subr.bf16.mxu0 (!%p138_p2), %v1023_v1  ;;  %921 = vmatprep.subr.bf16.mxu1 (!%p138_p2), %v1023_v1  ;;  %v1004_v3 = vld [vmem:[%s1210_s1 + $0x18] sm:$0xff] (!%p138_p2)   ;;  %vm212_vm2 = vsmask.f32 (!%p138_p2), 7424  ;;  %v1003_v13 = vld [vmem:[%s1210_s1 + $0x10] sm:$0xff] (!%p138_p2)   ;;  %vm622_vm3 = vcmask (!%p138_p2), 1046528  }
   0x7   : > { %900 = vmatpush3.bf16.msra.mxu0 (!%p138_p2), %v999_v0  ;;  %923 = vmatprep.mubr.msk.bf16.mxu1 (!%p138_p2), %vm1024_vm0, %v1023_v1 }
   0x8   : > { %922 = vmatpush3.bf16.msra.mxu1 (!%p138_p2), %v1000_v2  ;;  %901 = vmatprep.mubr.msk.bf16.mxu0 (!%p138_p2), %vm1024_vm0, %v1023_v1 }
   0x9   : > { %943 = vmatprep.subr.bf16.mxu0 (!%p138_p2), %v1023_v1  ;;  %965 = vmatprep.subr.bf16.mxu1 (!%p138_p2), %v1023_v1 }
   0xd   : > { %s1214_s13 = smov (!%p161_p3, %s823_s13), 1 }
   0xe   : > { %s987_s18 = smul.u32 44, %s1214_s13 }
   0xf   : > { %s988_s26 = smul.u32 72, %s1214_s13 }
  0x10   : > { %s1073_s21 = scalar_lea.vmem %s1209_s0, %s987_s18 }
  0x11   : > { %v1001_v4 = vld [vmem:[%s1073_s21] sm:$0xff]   ;;  %v1002_v5 = vld [vmem:[%s1073_s21 + $0x8] sm:$0xff]   ;;  %v1005_v9 = vld [vmem:[%s1073_s21 + $0x10] sm:$0xff]   ;;  %s1182_s4 = scalar_lea.vmem %s1212_s3, %s988_s26 }
  0x12   : > { %924 = vmatmul.mubr.msk.bf16.vlgmr.msra.gmra.mrb[0].mxu1 %vm258_vm1, %v1001_v4  ;;  %v214_v6 = vshrl.u32 %v1001_v4, 16  ;;  %v216_v7 = vshll.u32 %v1001_v4, 16  ;;  %v221_v8 = vshll.u32 %v1002_v5, 16  ;;  %v225_v14 = vshrl.u32 %v1002_v5, 16  ;;  %v1006_v19 = vld [vmem:[%s1073_s21 + $0x18] sm:$0xff]   ;;  %v1010_v39 = vld [vmem:[%s1073_s21 + $0xc] sm:$0xff]  }
  0x13   : > { %966 = vmatpush3.bf16.msra.mxu1 %v1004_v3  ;;  %927 = vmatprep.mubr.msk.bf16.mxu1 %vm1024_vm0, %v1023_v1  ;;  %v229_v15 = vshll.u32 %v1005_v9, 16  ;;  %v233_v21 = vshrl.u32 %v1005_v9, 16  ;;  %v237_v22 = vshll.u32 %v1006_v19, 16  ;;  %v180_v23 = vld [vmem:[%s1073_s21 + $0x20] sm:$0xf]  ;;  %v241_v29 = vshrl.u32 %v1006_v19, 16 }
  0x14   : > { %v218_v10 = vrot.slane %v216_v7, 1  ;;  %v223_v11 = vrot.slane %v221_v8, 1  ;;  %v183_v24 = vld [vmem:[%s1073_s21 + $0x24] sm:$0x1]  ;;  %v437_v34 = vld [vmem:[%s1073_s21 + $0x8] sm:$0xf]  ;;  %v843_v38 = vcombine.low %v180_v23, %v180_v23 }
  0x15   : > { %v231_v18 = vrot.slane %v229_v15, 1  ;;  %v239_v26 = vrot.slane %v237_v22, 1  ;;  %v836_v27 = vcombine.low %v180_v23, %v183_v24  ;;  %v436_v33 = vld [vmem:[%s1073_s21 + $0x4] sm:$0xf]  ;;  %v624_v44 = vrot.slane %v1010_v39, 1  ;;  %v1012_v50 = vld [vmem:[%s1073_s21 + $0x14] sm:$0xff]  }
  0x16   : > { %v219_v12 = vor.u32 %v218_v10, %v214_v6  ;;  %v227_v17 = vor.u32 %v225_v14, %v223_v11  ;;  %v615_v35 = vld [vmem:[%s1073_s21 + $0x4] sm:$0xe]  ;;  %v852_v37 = vcombine.low %v436_v33, %v437_v34  ;;  %v482_v48 = vshll.u32 %v1010_v39, 16  ;;  %v1013_v58 = vld [vmem:[%s1073_s21 + $0x1c] sm:$0xff]  }
  0x17   : > { %v235_v25 = vor.u32 %v233_v21, %v231_v18  ;;  %v245_v30 = vshll.u32 %v836_v27, 16  ;;  %v243_v31 = vor.u32 %v241_v29, %v239_v26  ;;  %v865_v40 = vcombine.low %v615_v35, %v437_v34  ;;  %v1014_v3 = vld [vmem:[%s1073_s21 + $0x24] sm:$0x1f]  }
  0x18   : > { %v224_v16 = vsel %vm212_vm2, %v219_v12, %v223_v11  ;;  %v232_v20 = vsel %vm212_vm2, %v227_v17, %v231_v18  ;;  %v249_v41 = vshrl.u32 %v836_v27, 16  ;;  %v477_v42 = vshll.u32 %v852_v37, 16 }
  0x19   : > { %902 = vmatmul.mubr.msk.bf16.vlgmr.msra.gmra.mrb[0].mxu0 %vm258_vm1, %v224_v16  ;;  %v240_v28 = vsel %vm212_vm2, %v235_v25, %v239_v26  ;;  %v247_v32 = vrot.slane %v245_v30, 1  ;;  %v623_v43 = vrot.slane %v865_v40, 1  ;;  %v475_v46 = vshrl.u32 %v852_v37, 16 }
  0x1a   : > { %944 = vmatpush3.bf16.msra.mxu0 %v1003_v13  ;;  %905 = vmatprep.mubr.msk.bf16.mxu0 %vm1024_vm0, %v1023_v1  ;;  %v479_v47 = vrot.slane %v477_v42, 1  ;;  %v484_v52 = vrot.slane %v482_v48, 1  ;;  %v626_v53 = vrot.slane %v1012_v50, 1  ;;  %v486_v55 = vshrl.u32 %v1010_v39, 16 }
  0x1b   : > { %928 = vmatmul.mubr.msk.bf16.gmra.mrb[4].mxu1 %vm258_vm1, %v1002_v5  ;;  %v248_v36 = vsel %vm212_vm2, %v243_v31, %v247_v32  ;;  %v251_v45 = vor.u32 %v249_v41, %v247_v32  ;;  %v625_v49 = vsel %vm622_vm3, %v623_v43, %v624_v44  ;;  %v490_v56 = vshll.u32 %v1012_v50, 16 }
  0x1c   : > { %931 = vmatprep.mubr.msk.bf16.mxu1 %vm1024_vm0, %v1023_v1  ;;  %v480_v51 = vor.u32 %v479_v47, %v475_v46  ;;  %v627_v57 = vsel %vm622_vm3, %v624_v44, %v626_v53  ;;  %v488_v59 = vor.u32 %v486_v55, %v484_v52  ;;  %v628_v61 = vrot.slane %v1013_v58, 1 }
  0x1d   : > { %v492_v60 = vrot.slane %v490_v56, 1  ;;  %v494_v63 = vshrl.u32 %v1012_v50, 16  ;;  %v498_v0 = vshll.u32 %v1013_v58, 16  ;;  %v630_v6 = vrot.slane %v1014_v3, 1 }
  0x1e   : > { %v485_v54 = vsel %vm212_vm2, %v480_v51, %v484_v52  ;;  %v629_v2 = vsel %vm622_vm3, %v626_v53, %v628_v61  ;;  %v502_v8 = vshrl.u32 %v1013_v58, 16  ;;  %v510_v14 = vshrl.u32 %v1014_v3, 16 }
  0x1f   : > { %v493_v62 = vsel %vm212_vm2, %v488_v59, %v492_v60  ;;  %v496_v4 = vor.u32 %v494_v63, %v492_v60  ;;  %v500_v5 = vrot.slane %v498_v0, 1  ;;  %v631_v10 = vsel %vm622_vm3, %v628_v61, %v630_v6 }
  0x21   : > { %906 = vmatmul.mubr.msk.bf16.gmra.mrb[4].mxu0 %vm258_vm1, %v232_v20  ;;  %v501_v7 = vsel %vm212_vm2, %v496_v4, %v500_v5  ;;  %v504_v11 = vor.u32 %v502_v8, %v500_v5  ;;  %v1176_v8 = vld [vmem:[%s1211_s2] ss:$0 sm:$0xff] }
  0x22   : > { %909 = vmatprep.mubr.msk.bf16.mxu0 %vm1024_vm0, %v1023_v1 }
  0x23   : > { %932 = vmatmul.mubr.msk.bf16.gmra.mrb[8].mxu1 %vm258_vm1, %v1005_v9  ;;  %v506_v9 = vshll.u32 %v1014_v3, 16 }
  0x24   : > { %935 = vmatprep.mubr.msk.bf16.mxu1 %vm1024_vm0, %v1023_v1 }
  0x25   : > { %v508_v12 = vrot.slane %v506_v9, 1 }
  0x27   : > { %v509_v13 = vsel %vm212_vm2, %v504_v11, %v508_v12  ;;  %v512_v15 = vor.u32 %v510_v14, %v508_v12 }
  0x29   : > { %910 = vmatmul.mubr.msk.bf16.gmra.mrb[8].mxu0 %vm258_vm1, %v240_v28 }
  0x2a   : > { %913 = vmatprep.mubr.msk.bf16.mxu0 %vm1024_vm0, %v1023_v1 }
  0x2b   : > { %936 = vmatmul.mubr.msk.bf16.gmra.mrb[12].mxu1 %vm258_vm1, %v1006_v19 }
  0x2c   : > { %939 = vmatprep.mubr.msk.bf16.mxu1 %vm1024_vm0, %v1023_v1 }
  0x31   : > { %914 = vmatmul.mubr.msk.bf16.gmra.mrb[12].mxu0 %vm258_vm1, %v248_v36 }
  0x32   : > { %917 = vmatprep.mubr.msk.bf16.mxu0 %vm1024_vm0, %v1023_v1 }
  0x33   : > { %940 = vmatmul.mubr.msk.bf16.gmra.mrb[16].mxu1 %vm258_vm1, %v843_v38 }
  0x34   : > { %967 = vmatprep.mubr.msk.bf16.mxu1 %vm1024_vm0, %v1023_v1 }
  0x39   : > { %918 = vmatmul.mubr.msk.bf16.gmra.mrb[16].mxu0 %vm258_vm1, %v251_v45 }
  0x3a   : > { %945 = vmatprep.mubr.msk.bf16.mxu0 %vm1024_vm0, %v1023_v1 }
  0x3b   : > { %968 = vmatmul.mubr.msk.bf16.vlgmr.msra.gmra.mrb[20].mxu1 %vm258_vm1, %v625_v49 }
  0x3c   : > { %971 = vmatprep.mubr.msk.bf16.mxu1 %vm1024_vm0, %v1023_v1 }
  0x41   : > { %946 = vmatmul.mubr.msk.bf16.vlgmr.msra.gmra.mrb[20].mxu0 %vm258_vm1, %v485_v54 }
  0x42   : > { %949 = vmatprep.mubr.msk.bf16.mxu0 %vm1024_vm0, %v1023_v1 }
  0x43   : > { %972 = vmatmul.mubr.msk.bf16.gmra.mrb[24].mxu1 %vm258_vm1, %v627_v57 }
  0x44   : > { %975 = vmatprep.mubr.msk.bf16.mxu1 %vm1024_vm0, %v1023_v1 }
  0x49   : > { %950 = vmatmul.mubr.msk.bf16.gmra.mrb[24].mxu0 %vm258_vm1, %v493_v62 }
  0x4a   : > { %953 = vmatprep.mubr.msk.bf16.mxu0 %vm1024_vm0, %v1023_v1 }
  0x4b   : > { %976 = vmatmul.mubr.msk.bf16.gmra.mrb[28].mxu1 %vm258_vm1, %v629_v2 }
  0x4c   : > { %979 = vmatprep.mubr.msk.bf16.mxu1 %vm1024_vm0, %v1023_v1 }
  0x51   : > { %954 = vmatmul.mubr.msk.bf16.gmra.mrb[28].mxu0 %vm258_vm1, %v501_v7 }
  0x52   : > { %957 = vmatprep.mubr.msk.bf16.mxu0 %vm1024_vm0, %v1023_v1 }
  0x53   : > { %980 = vmatmul.mubr.msk.bf16.gmra.mrb[32].mxu1 %vm258_vm1, %v631_v10 }
  0x54   : > { %983 = vmatprep.mubr.msk.bf16.mxu1 %vm1024_vm0, %v1023_v1 }
  0x59   : > { %958 = vmatmul.mubr.msk.bf16.gmra.mrb[32].mxu0 %vm258_vm1, %v509_v13 }
  0x5a   : > { %961 = vmatprep.mubr.msk.bf16.mxu0 %vm1024_vm0, %v1023_v1 }
  0x5b   : > { %984 = vmatmul.mubr.msk.bf16.gmra.mrb[36].mxu1 %vm258_vm1, %v630_v6 }
  0x61   : > { %962 = vmatmul.mubr.msk.bf16.gmra.mrb[36].mxu0 %vm258_vm1, %v512_v15 }
  0xe5   : > { %v398_v16 = vpop.f32.mrb[0].mxu1 }
  0xe6   : > { %v925_v17 = vpop.f32.mrb[1].mxu1 }
  0xe7   : > { %v401_v18 = vpop.f32.mrb[2].mxu1 }
  0xe8   : > { %v926_v19 = vpop.f32.mrb[3].mxu1 }
  0xec   : > { %v308_v20 = vpop.f32.mrb[0].mxu0 }
  0xed   : > { %v399_v21 = vadd.f32 %v398_v16, %v308_v20  ;;  %v903_v22 = vpop.f32.mrb[1].mxu0 }
  0xee   : > { %v311_v23 = vpop.f32.mrb[2].mxu0  ;;  %v406_v24 = vpop.f32.mrb[4].mxu1 }
  0xef   : > { %v402_v25 = vadd.f32 %v401_v18, %v311_v23  ;;  %v904_v26 = vpop.f32.mrb[3].mxu0  ;;  %v929_v27 = vpop.f32.mrb[5].mxu1 }
  0xf0   : > { %v409_v28 = vpop.f32.mrb[6].mxu1 }
  0xf1   : > { %v930_v29 = vpop.f32.mrb[7].mxu1 }
  0xf4   : > { %v316_v1 = vpop.f32.mrb[4].mxu0 }
  0xf5   : > { %v407_v30 = vadd.f32 %v406_v24, %v316_v1  ;;  %v907_v31 = vpop.f32.mrb[5].mxu0 }
  0xf6   : > { %v319_v32 = vpop.f32.mrb[6].mxu0  ;;  %v414_v33 = vpop.f32.mrb[8].mxu1 }
  0xf7   : > { %v410_v34 = vadd.f32 %v409_v28, %v319_v32  ;;  %v908_v35 = vpop.f32.mrb[7].mxu0  ;;  %v933_v36 = vpop.f32.mrb[9].mxu1 }
  0xf8   : > { %v417_v37 = vpop.f32.mrb[10].mxu1 }
  0xf9   : > { %v934_v38 = vpop.f32.mrb[11].mxu1 }
  0xfc   : > { %v324_v39 = vpop.f32.mrb[8].mxu0 }
  0xfd   : > { %v1162_v40 = vadd.f32 %v414_v33, %v324_v39  ;;  %v911_v41 = vpop.f32.mrb[9].mxu0 }
  0xfe   : > { %v327_v42 = vpop.f32.mrb[10].mxu0  ;;  %v422_v43 = vpop.f32.mrb[12].mxu1 }
  0xff   : > { %v1164_v44 = vadd.f32 %v417_v37, %v327_v42  ;;  %v912_v45 = vpop.f32.mrb[11].mxu0  ;;  %v937_v46 = vpop.f32.mrb[13].mxu1 }
 0x100   : > { %v425_v47 = vpop.f32.mrb[14].mxu1 }
 0x101   : > { %v938_v48 = vpop.f32.mrb[15].mxu1 }
 0x104   : > { %v332_v49 = vpop.f32.mrb[12].mxu0 }
 0x105   : > { %v1166_v50 = vadd.f32 %v422_v43, %v332_v49  ;;  %v915_v51 = vpop.f32.mrb[13].mxu0 }
 0x106   : > { %v335_v52 = vpop.f32.mrb[14].mxu0  ;;  %v430_v53 = vpop.f32.mrb[16].mxu1 }
 0x107   : > { %v1168_v54 = vadd.f32 %v425_v47, %v335_v52  ;;  %v916_v55 = vpop.f32.mrb[15].mxu0  ;;  %v941_v56 = vpop.f32.mrb[17].mxu1 }
 0x108   : > { %v433_v57 = vpop.f32.mrb[18].mxu1 }
 0x109   : > { %v942_v58 = vpop.f32.mrb[19].mxu1 }
 0x10c   : > { %v340_v59 = vpop.f32.mrb[16].mxu0 }
 0x10d   : > { %v1170_v60 = vadd.f32 %v430_v53, %v340_v59  ;;  %v919_v61 = vpop.f32.mrb[17].mxu0 }
 0x10e   : > { %v343_v62 = vpop.f32.mrb[18].mxu0  ;;  %v687_v63 = vpop.f32.mrb[20].mxu1 }
 0x10f   : > { %v920_v0 = vpop.f32.mrb[19].mxu0  ;;  %v969_v2 = vpop.f32.mrb[21].mxu1 }
 0x110   : > { %v690_v3 = vpop.f32.mrb[22].mxu1 }
 0x111   : > { %v970_v4 = vpop.f32.mrb[23].mxu1 }
 0x114   : > { %v568_v5 = vpop.f32.mrb[20].mxu0 }
 0x115   : > { %v606_v6 = vadd.f32 %v568_v5, %v399_v21  ;;  %v947_v7 = vpop.f32.mrb[21].mxu0 }
 0x116   : > { %v571_v9 = vpop.f32.mrb[22].mxu0  ;;  %v695_v10 = vpop.f32.mrb[24].mxu1 }
 0x117   : > { %v725_v11 = vadd.f32 %v687_v63, %v606_v6  ;;  %v607_v12 = vadd.f32 %v571_v9, %v402_v25  ;;  %v948_v13 = vpop.f32.mrb[23].mxu0  ;;  %v973_v14 = vpop.f32.mrb[25].mxu1 }
 0x118   : > { %v698_v15 = vpop.f32.mrb[26].mxu1 }
 0x119   : > { %v741_v16 = vadd.f32 %v1176_v8, %v725_v11  ;;  %v726_v17 = vadd.f32 %v690_v3, %v607_v12  ;;  %v974_v18 = vpop.f32.mrb[27].mxu1 }
 0x11b   : > { %v750_v19 = vmax.f32 %v741_v16, 0.0  ;;  %v742_v20 = vadd.f32 %v1176_v8, %v726_v17 }
 0x11c   : > { %v576_v21 = vpop.f32.mrb[24].mxu0 }
 0x11d   : > { %759 = vst [vmem:[%s1182_s4] sm:$0xff] %v750_v19  ;;  %v751_v22 = vmax.f32 %v742_v20, 0.0  ;;  %v608_v23 = vadd.f32 %v576_v21, %v407_v30  ;;  %v951_v24 = vpop.f32.mrb[25].mxu0 }
 0x11e   : > { %v579_v25 = vpop.f32.mrb[26].mxu0  ;;  %v703_v26 = vpop.f32.mrb[28].mxu1 }
 0x11f   : > { %760 = vst [vmem:[%s1182_s4 + $0x8] sm:$0xff] %v751_v22  ;;  %v727_v27 = vadd.f32 %v695_v10, %v608_v23  ;;  %v609_v28 = vadd.f32 %v579_v25, %v410_v34  ;;  %v952_v29 = vpop.f32.mrb[27].mxu0  ;;  %v977_v1 = vpop.f32.mrb[29].mxu1 }
 0x120   : > { %v706_v31 = vpop.f32.mrb[30].mxu1 }
 0x121   : > { %v743_v32 = vadd.f32 %v1176_v8, %v727_v27  ;;  %v728_v33 = vadd.f32 %v698_v15, %v609_v28  ;;  %v978_v35 = vpop.f32.mrb[31].mxu1 }
 0x123   : > { %v752_v36 = vmax.f32 %v743_v32, 0.0  ;;  %v744_v37 = vadd.f32 %v1176_v8, %v728_v33 }
 0x124   : > { %v584_v38 = vpop.f32.mrb[28].mxu0 }
 0x125   : > { %761 = vst [vmem:[%s1182_s4 + $0x10] sm:$0xff] %v752_v36  ;;  %v753_v30 = vmax.f32 %v744_v37, 0.0  ;;  %v610_v39 = vadd.f32 %v584_v38, %v1162_v40  ;;  %v955_v41 = vpop.f32.mrb[29].mxu0 }
 0x126   : > { %v587_v42 = vpop.f32.mrb[30].mxu0  ;;  %v711_v34 = vpop.f32.mrb[32].mxu1 }
 0x127   : > { %762 = vst [vmem:[%s1182_s4 + $0x18] sm:$0xff] %v753_v30  ;;  %v729_v43 = vadd.f32 %v703_v26, %v610_v39  ;;  %v611_v45 = vadd.f32 %v587_v42, %v1164_v44  ;;  %v956_v46 = vpop.f32.mrb[31].mxu0  ;;  %v981_v47 = vpop.f32.mrb[33].mxu1 }
 0x128   : > { %v714_v48 = vpop.f32.mrb[34].mxu1 }
 0x129   : > { %v745_v49 = vadd.f32 %v1176_v8, %v729_v43  ;;  %v730_v51 = vadd.f32 %v706_v31, %v611_v45  ;;  %v982_v52 = vpop.f32.mrb[35].mxu1 }
 0x12b   : > { %v754_v53 = vmax.f32 %v745_v49, 0.0  ;;  %v746_v55 = vadd.f32 %v1176_v8, %v730_v51 }
 0x12c   : > { %v592_v40 = vpop.f32.mrb[32].mxu0 }
 0x12d   : > { %763 = vst [vmem:[%s1182_s4 + $0x20] sm:$0xff] %v754_v53  ;;  %v755_v56 = vmax.f32 %v746_v55, 0.0  ;;  %v612_v57 = vadd.f32 %v592_v40, %v1166_v50  ;;  %v959_v58 = vpop.f32.mrb[33].mxu0 }
 0x12e   : > { %v595_v59 = vpop.f32.mrb[34].mxu0  ;;  %v719_v44 = vpop.f32.mrb[36].mxu1 }
 0x12f   : > { %764 = vst [vmem:[%s1182_s4 + $0x28] sm:$0xff] %v755_v56  ;;  %v731_v61 = vadd.f32 %v711_v34, %v612_v57  ;;  %v613_v62 = vadd.f32 %v595_v59, %v1168_v54  ;;  %v960_v63 = vpop.f32.mrb[35].mxu0  ;;  %v985_v0 = vpop.f32.mrb[37].mxu1 }
 0x130   : > { %v722_v2 = vpop.f32.mrb[38].mxu1 }
 0x131   : > { %v747_v3 = vadd.f32 %v1176_v8, %v731_v61  ;;  %v732_v4 = vadd.f32 %v714_v48, %v613_v62  ;;  %v986_v5 = vpop.f32.mrb[39].mxu1 }
 0x133   : > { %v756_v6 = vmax.f32 %v747_v3, 0.0  ;;  %v748_v50 = vadd.f32 %v1176_v8, %v732_v4 }
 0x134   : > { %v600_v7 = vpop.f32.mrb[36].mxu0 }
 0x135   : > { %765 = vst [vmem:[%s1182_s4 + $0x30] sm:$0xff] %v756_v6  ;;  %v757_v9 = vmax.f32 %v748_v50, 0.0  ;;  %v614_v10 = vadd.f32 %v600_v7, %v1170_v60  ;;  %v963_v11 = vpop.f32.mrb[37].mxu0 }
 0x136   : > { %v603_v12 = vpop.f32.mrb[38].mxu0 }
 0x137   : > { %766 = vst [vmem:[%s1182_s4 + $0x38] sm:$0xff] %v757_v9  ;;  %v733_v54 = vadd.f32 %v719_v44, %v614_v10  ;;  %v964_v13 = vpop.f32.mrb[39].mxu0 }
 0x139   : > { %v749_v14 = vadd.f32 %v1176_v8, %v733_v54 }
 0x13b   : > { %v758_v15 = vmax.f32 %v749_v14, 0.0 }
 0x13d   : > { %767 = vst [vmem:[%s1182_s4 + $0x40] sm:$0xff] %v758_v15 }
 0x13e PF: > { %s13_s12 = sadd.s32 1, %s1021_s12  }
 0x13f   : > { %p10_p4 = scmp.ge.s32.totalorder %s13_s12, 4  }
 0x141   :  { %12 = sbr.rel (!%p10_p4) target bundleno = 1 (0x1), region = 65 }

</bundles_post_ra>
